<compile_context>
chip_gen: v7x
topology: tpu7x:2x2x1
jax: 0.10.0
libtpu: 0.0.40
codegen_flags: <defaults>
</compile_context>

<pallas_src>
import math

import jax
import jax.numpy as jnp
from jax.experimental import pallas as pl
from jax.experimental.pallas import tpu as pltpu

# ---- model config: energy_net_config = {'hidden_dim': [32, 32], 'n_layers': 2,
#                                          'act_fn': 'relu'}, in_dim = 18 ----
IN_DIM = 18          # 3 (dr_norm) + 3 (dr.orient) + 3 (dr.n_orient) + 9 (orient.n_orient)
H0 = 32
H1 = 32
EPS = 1e-8

# Packed parameter slab (160, 64) f32; all row offsets 8-aligned.
PARAM_COLS = 2 * H0           # 64
ROW_WIN = 0                   # rows   0..63 : [w0 ; p0]           (64, 18)  fwd input matmul
ROW_W1 = 64                   # rows  64..95 : [w1 | w1^T]         (32, 64)
ROW_WBK = 96                  # rows  96..113: [w0^T | p0^T]       (18, 64)  bwd matmul
ROW_VEC = 120                 # rows 120..151: col0=b0 col1=pb0 col2=b1 col3=w2 col4[r120]=b2
PARAM_ROWS = 160


# ----------------------------- Pallas kernel ------------------------------ #
def _mlp_fwd_bwd_kernel(x_ref, p_ref, dfeat_ref, energy_ref):
    x = x_ref[...]                                                   # (18, T): particles on lanes

    # Static slices of the single resident parameter slab (8-aligned row sections).
    w_in = p_ref[ROW_WIN:ROW_WIN + 2 * H0, 0:IN_DIM]                 # (64, 18) [w0 ; p0]
    w1 = p_ref[ROW_W1:ROW_W1 + H0, 0:H1]                             # (32, 32)
    w1t = p_ref[ROW_W1:ROW_W1 + H0, H1:2 * H1]                       # (32, 32) = w1^T
    w_bwd = p_ref[ROW_WBK:ROW_WBK + IN_DIM, 0:2 * H0]                # (18, 64) [w0^T | p0^T]
    b0c = p_ref[ROW_VEC:ROW_VEC + H0, 0:1]                           # (32, 1)
    pb0c = p_ref[ROW_VEC:ROW_VEC + H0, 1:2]                          # (32, 1)
    b1c = p_ref[ROW_VEC:ROW_VEC + H0, 2:3]                           # (32, 1)
    w2c = p_ref[ROW_VEC:ROW_VEC + H0, 3:4]                           # (32, 1)
    b2 = p_ref[ROW_VEC:ROW_VEC + 1, 4:5]                             # (1, 1)

    # ---- forward ----
    # ResidualBlock(18 -> 32): relu(W0 x + b0) + (P0 x + pb0); both matmuls fused into
    # one (64, 18) @ (18, T) MXU push, then split on 8-aligned sublanes (free).
    h = jnp.dot(w_in, x, preferred_element_type=jnp.float32)         # (64, T)
    h0p = h[0:H0, :] + b0c                                           # (32, T)
    proj = h[H0:2 * H0, :] + pb0c                                    # (32, T)
    h0 = jnp.maximum(h0p, 0.0) + proj                                # (32, T)

    # ResidualBlock(32 -> 32, same_dim): relu(W1 h0 + b1) + h0
    h1p = jnp.dot(w1, h0, preferred_element_type=jnp.float32) + b1c  # (32, T)
    h1 = jnp.maximum(h1p, 0.0) + h0                                  # (32, T)

    # Final Linear(32 -> 1): VPU multiply + sublane reduce (avoids a 1-row MXU push).
    # gh1 doubles as dE/dh1 for the backward pass (broadcast hoisted, used twice).
    gh1 = jnp.broadcast_to(w2c, h1.shape)                            # (32, T)
    energy_ref[...] = jnp.sum(h1 * gh1, axis=0, keepdims=True) + b2  # (1, T)

    # ---- analytic backward: d(sum E)/d(features) ----
    gh0 = jnp.dot(w1t, jnp.where(h1p > 0.0, gh1, 0.0),
                  preferred_element_type=jnp.float32) + gh1          # (32, T)
    g_stack = jnp.concatenate(
        [jnp.where(h0p > 0.0, gh0, 0.0), gh0], axis=0)               # (64, T), 8-aligned concat
    dfeat_ref[...] = jnp.dot(w_bwd, g_stack,
                             preferred_element_type=jnp.float32)     # (18, T)


def pallas_energy_and_featgrad(feats_t, param_slab, row_tile=4096):
    """feats_t: (IN_DIM, N) f32. Returns energy (1, N) and d(sum E)/dfeat (IN_DIM, N)."""
    n = feats_t.shape[1]
    row_tile = max(128, (row_tile // 128) * 128)

    flops_per_row = 2 * (2 * IN_DIM * 2 * H0 + 2 * H0 * H1) + 8 * H1   # both 32x32 matmuls counted
    cost = pl.CostEstimate(
        flops=n * flops_per_row, transcendentals=0,
        bytes_accessed=4 * (n * (2 * IN_DIM + 1) + PARAM_ROWS * PARAM_COLS))
    out_shape = (jax.ShapeDtypeStruct((IN_DIM, n), jnp.float32),   # dfeat
                 jax.ShapeDtypeStruct((1, n), jnp.float32))        # energy

    if n <= row_tile:
        # Small N: whole-array VMEM blocks, no grid.
        dfeat, energy = pl.pallas_call(
            _mlp_fwd_bwd_kernel,
            out_shape=out_shape,
            in_specs=[pl.BlockSpec(memory_space=pltpu.MemorySpace.VMEM),
                      pl.BlockSpec(memory_space=pltpu.MemorySpace.VMEM)],
            out_specs=(pl.BlockSpec(memory_space=pltpu.MemorySpace.VMEM),
                       pl.BlockSpec(memory_space=pltpu.MemorySpace.VMEM)),
            cost_estimate=cost,
        )(feats_t, param_slab)
    else:
        # Production sizes: 1-D parallel lane grid (no host pad; Pallas masks the
        # final partial block). Keep >= 2 grid steps so v7x's two TensorCores both
        # get work; never drop below 512 lanes per step.
        half = ((n + 1) // 2 + 127) // 128 * 128
        tile = min(row_tile, max(512, half))
        dfeat, energy = pl.pallas_call(
            _mlp_fwd_bwd_kernel,
            out_shape=out_shape,
            grid=(pl.cdiv(n, tile),),
            in_specs=[
                pl.BlockSpec((IN_DIM, tile), lambda i: (0, i)),
                pl.BlockSpec((PARAM_ROWS, PARAM_COLS), lambda i: (0, 0)),  # resident slab
            ],
            out_specs=(
                pl.BlockSpec((IN_DIM, tile), lambda i: (0, i)),
                pl.BlockSpec((1, tile), lambda i: (0, i)),
            ),
            compiler_params=pltpu.CompilerParams(
                dimension_semantics=("parallel",),
                vmem_limit_bytes=48 * 1024 * 1024),
            cost_estimate=cost,
        )(feats_t, param_slab)

    return energy, dfeat


# ---------------------- pure-JAX glue (feature build) ---------------------- #
def build_features_T(dr, orientation, n_orientation):
    """Feature construction with the 18-dim feature axis leading: (IN_DIM, B*Nb)."""
    B, Nb, _ = dr.shape
    dr = dr + EPS
    R = jnp.linalg.norm(dr, axis=-1, keepdims=True)                           # (B, Nb, 1)
    dr_norm = dr / R                                                          # (B, Nb, 3)
    dr_orient = jnp.einsum("bnk,bkh->hbn", dr_norm, orientation)              # (3, B, Nb)
    dr_n_orient = jnp.einsum("bnk,bnkh->hbn", dr_norm, n_orientation)         # (3, B, Nb)
    orient_n_orient = jnp.einsum("bhl,bnhm->lmbn", orientation, n_orientation)  # (3,3,B,Nb)
    feats_t = jnp.concatenate(
        [jnp.moveaxis(dr_norm, -1, 0),                                        # (3, B, Nb)
         dr_orient, dr_n_orient,
         orient_n_orient.reshape(9, B, Nb)], axis=0)                          # (18, B, Nb)
    return feats_t.reshape(IN_DIM, B * Nb)


def energy_predictor_residual_forward(dr, orientation, n_orientation, params,
                                      row_tile=4096):
    """Matches EnergyPredictor_Residual.forward (inference: dropout/bn inactive)."""
    B, Nb, _ = dr.shape
    # fcR (cosine cutoff) is computed in the torch reference but never consumed; omitted.
    feats_t, vjp_fn = jax.vjp(
        lambda d, o: build_features_T(d, o, n_orientation), dr, orientation)

    energy_row, dfeat_t = pallas_energy_and_featgrad(feats_t, params["slab"],
                                                     row_tile=row_tile)
    energy = energy_row.reshape(B, Nb, 1)
    predicted_energy = jnp.sum(energy, axis=1)                                # (B, 1)

    # torch.autograd.grad(predicted_energy.sum(), {dr, orientation}) ==
    # VJP of the feature construction with the kernel-computed cotangent dE/dfeatures.
    d_dr, d_ori = vjp_fn(dfeat_t)
    predicted_force = jnp.sum(d_dr, axis=1).reshape(B, 3)                     # (B, 3)
    predicted_torque = (jnp.cross(d_ori[:, :, 0], orientation[:, :, 0])
                        + jnp.cross(d_ori[:, :, 1], orientation[:, :, 1])
                        + jnp.cross(d_ori[:, :, 2], orientation[:, :, 2]))
    return predicted_force, predicted_torque, predicted_energy


# ----------------------------- params (deterministic) ---------------------- #
def init_params(key):
    def linear(k, out_dim, in_dim):
        k1, k2 = jax.random.split(k)
        bound = 1.0 / math.sqrt(in_dim)
        w = jax.random.uniform(k1, (out_dim, in_dim), jnp.float32, -bound, bound)
        b = jax.random.uniform(k2, (1, out_dim), jnp.float32, -bound, bound)
        return w, b

    k0, k1, k2, k3 = jax.random.split(key, 4)
    w0, b0 = linear(k0, H0, IN_DIM)     # ResidualBlock(18, 32).linear
    p0, pb0 = linear(k1, H0, IN_DIM)    # ResidualBlock(18, 32).projection
    w1, b1 = linear(k2, H1, H0)         # ResidualBlock(32, 32).linear (same_dim)
    w2, b2 = linear(k3, 1, H1)          # final Linear(32, 1)

    # Pack everything into one (160, 64) slab (row offsets 8-aligned).
    slab = jnp.zeros((PARAM_ROWS, PARAM_COLS), jnp.float32)
    slab = slab.at[ROW_WIN:ROW_WIN + 2 * H0, 0:IN_DIM].set(
        jnp.concatenate([w0, p0], axis=0))                           # (64, 18)
    slab = slab.at[ROW_W1:ROW_W1 + H0, 0:H1].set(w1)                 # (32, 32)
    slab = slab.at[ROW_W1:ROW_W1 + H0, H1:2 * H1].set(w1.T)          # (32, 32)
    slab = slab.at[ROW_WBK:ROW_WBK + IN_DIM, 0:2 * H0].set(
        jnp.concatenate([w0.T, p0.T], axis=1))                       # (18, 64)
    slab = slab.at[ROW_VEC:ROW_VEC + H0, 0].set(b0[0])
    slab = slab.at[ROW_VEC:ROW_VEC + H0, 1].set(pb0[0])
    slab = slab.at[ROW_VEC:ROW_VEC + H0, 2].set(b1[0])
    slab = slab.at[ROW_VEC:ROW_VEC + H0, 3].set(w2[0])
    slab = slab.at[ROW_VEC, 4].set(b2[0, 0])

    return {"w0": w0, "b0": b0, "p0": p0, "pb0": pb0,
            "w1": w1, "b1": b1, "w2": w2, "b2": b2, "slab": slab}


# --------------------------- pure-JAX reference ---------------------------- #
def _mlp_ref(feats, p):
    h0p = feats @ p["w0"].T + p["b0"]
    h0 = jnp.maximum(h0p, 0.0) + (feats @ p["p0"].T + p["pb0"])
    h1p = h0 @ p["w1"].T + p["b1"]
    h1 = jnp.maximum(h1p, 0.0) + h0
    return h1 @ p["w2"].T + p["b2"]


def _reference_forward(dr, orientation, n_orientation, params):
    B, Nb, _ = dr.shape

    def total_energy(d, o):
        feats = build_features_T(d, o, n_orientation).T              # (B*Nb, 18)
        e = _mlp_ref(feats, params).reshape(B, Nb, 1)
        return jnp.sum(e), jnp.sum(e, axis=1)

    (_, pred_e), (d_dr, d_ori) = jax.value_and_grad(
        total_energy, argnums=(0, 1), has_aux=True)(dr, orientation)
    force = jnp.sum(d_dr, axis=1).reshape(B, 3)
    tq = (jnp.cross(d_ori[:, :, 0], orientation[:, :, 0])
          + jnp.cross(d_ori[:, :, 1], orientation[:, :, 1])
          + jnp.cross(d_ori[:, :, 2], orientation[:, :, 2]))
    return force, tq, pred_e


# ----------------------------------- main ---------------------------------- #
if __name__ == "__main__":
    key = jax.random.PRNGKey(0)
    kp, kd, ko, kn = jax.random.split(key, 4)

    params = init_params(kp)
    fwd = jax.jit(energy_predictor_residual_forward)

    # ---- small case (whole-array, no-grid path), toy shapes ----
    B, Nb = 2, 8
    dr = jax.random.normal(kd, (B, Nb, 3), jnp.float32) * 2.0
    orientation = jax.random.normal(ko, (B, 3, 3), jnp.float32)
    n_orientation = jax.random.normal(kn, (B, Nb, 3, 3), jnp.float32)

    force, torque, energy = fwd(dr, orientation, n_orientation, params)
    jax.block_until_ready((force, torque, energy))

    f_ref, t_ref, e_ref = _reference_forward(dr, orientation, n_orientation, params)
    assert energy.shape == (B, 1) and force.shape == (B, 3) and torque.shape == (B, 3)
    assert jnp.allclose(energy, e_ref, rtol=1e-4, atol=2e-4)
    assert jnp.allclose(force, f_ref, rtol=1e-4, atol=2e-4)
    assert jnp.allclose(torque, t_ref, rtol=1e-4, atol=2e-4)

    # ---- larger case exercising the tiled grid path (incl. a partial last block) ----
    B2, Nb2 = 4, 160   # B2*Nb2 = 640 -> grid = cdiv(640, 256) = 3, last block half-full
    kd2, ko2, kn2 = jax.random.split(jax.random.PRNGKey(1), 3)
    dr2 = jax.random.normal(kd2, (B2, Nb2, 3), jnp.float32) * 2.0
    ori2 = jax.random.normal(ko2, (B2, 3, 3), jnp.float32)
    nori2 = jax.random.normal(kn2, (B2, Nb2, 3, 3), jnp.float32)

    fwd_grid = jax.jit(lambda d, o, no, p: energy_predictor_residual_forward(
        d, o, no, p, row_tile=256))
    f2, t2, e2 = fwd_grid(dr2, ori2, nori2, params)
    jax.block_until_ready((f2, t2, e2))

    f2r, t2r, e2r = _reference_forward(dr2, ori2, nori2, params)
    assert jnp.allclose(e2, e2r, rtol=1e-3, atol=1e-2)
    assert jnp.allclose(f2, f2r, rtol=1e-3, atol=1e-2)
    assert jnp.allclose(t2, t2r, rtol=1e-3, atol=1e-2)

    print("KERNEL_OK")
</pallas_src>

<mosaic_0001>
module attributes {stable_mosaic.version = 11 : i64} {
  func.func @_mlp_fwd_bwd_kernel(%arg0: memref<18x16xf32, #tpu.memory_space<vmem>>, %arg1: memref<160x64xf32, #tpu.memory_space<vmem>>, %arg2: memref<18x16xf32, #tpu.memory_space<vmem>>, %arg3: memref<1x16xf32, #tpu.memory_space<vmem>>) attributes {dimension_semantics = [], scalar_prefetch = 0 : i64, scratch_operands = 0 : i64, tpu.core_type = #tpu.core_type<tc>} {
    %c0 = arith.constant 0 : index
    %c0_0 = arith.constant 0 : index
    %0 = vector.load %arg0[%c0, %c0_0] : memref<18x16xf32, #tpu.memory_space<vmem>>, vector<18x16xf32>
    %c0_1 = arith.constant 0 : index
    %c0_2 = arith.constant 0 : index
    %1 = vector.load %arg1[%c0_1, %c0_2] : memref<160x64xf32, #tpu.memory_space<vmem>>, vector<64x18xf32>
    %c64 = arith.constant 64 : index
    %c0_3 = arith.constant 0 : index
    %2 = vector.load %arg1[%c64, %c0_3] : memref<160x64xf32, #tpu.memory_space<vmem>>, vector<32x32xf32>
    %c64_4 = arith.constant 64 : index
    %c32 = arith.constant 32 : index
    %3 = vector.load %arg1[%c64_4, %c32] : memref<160x64xf32, #tpu.memory_space<vmem>>, vector<32x32xf32>
    %c96 = arith.constant 96 : index
    %c0_5 = arith.constant 0 : index
    %4 = vector.load %arg1[%c96, %c0_5] : memref<160x64xf32, #tpu.memory_space<vmem>>, vector<18x64xf32>
    %c120 = arith.constant 120 : index
    %c0_6 = arith.constant 0 : index
    %5 = vector.load %arg1[%c120, %c0_6] : memref<160x64xf32, #tpu.memory_space<vmem>>, vector<32x1xf32>
    %c120_7 = arith.constant 120 : index
    %c1 = arith.constant 1 : index
    %6 = vector.load %arg1[%c120_7, %c1] : memref<160x64xf32, #tpu.memory_space<vmem>>, vector<32x1xf32>
    %c120_8 = arith.constant 120 : index
    %c2 = arith.constant 2 : index
    %7 = vector.load %arg1[%c120_8, %c2] : memref<160x64xf32, #tpu.memory_space<vmem>>, vector<32x1xf32>
    %c120_9 = arith.constant 120 : index
    %c3 = arith.constant 3 : index
    %8 = vector.load %arg1[%c120_9, %c3] : memref<160x64xf32, #tpu.memory_space<vmem>>, vector<32x1xf32>
    %c120_10 = arith.constant 120 : index
    %c4 = arith.constant 4 : index
    %9 = vector.load %arg1[%c120_10, %c4] : memref<160x64xf32, #tpu.memory_space<vmem>>, vector<1x1xf32>
    %cst = arith.constant dense<0.000000e+00> : vector<64x16xf32>
    %10 = tpu.matmul %1, %0, %cst {dimension_numbers = #tpu.dot_dimension_numbers<[1], [0], [0], [1], [0, 0, 1, 1], [], []>} : vector<64x18xf32>, vector<18x16xf32>, vector<64x16xf32> -> vector<64x16xf32>
    %11 = vector.extract_strided_slice %10 {offsets = [0, 0], sizes = [32, 16], strides = [1, 1]} : vector<64x16xf32> to vector<32x16xf32>
    %12 = vector.broadcast %5 : vector<32x1xf32> to vector<32x16xf32>
    %13 = arith.addf %11, %12 : vector<32x16xf32>
    %14 = vector.extract_strided_slice %10 {offsets = [32, 0], sizes = [32, 16], strides = [1, 1]} : vector<64x16xf32> to vector<32x16xf32>
    %15 = vector.broadcast %6 : vector<32x1xf32> to vector<32x16xf32>
    %16 = arith.addf %14, %15 : vector<32x16xf32>
    %cst_11 = arith.constant 0.000000e+00 : f32
    %17 = vector.broadcast %cst_11 : f32 to vector<32x16xf32>
    %18 = arith.maximumf %13, %17 : vector<32x16xf32>
    %19 = arith.addf %18, %16 : vector<32x16xf32>
    %cst_12 = arith.constant dense<0.000000e+00> : vector<32x16xf32>
    %20 = tpu.matmul %2, %19, %cst_12 {dimension_numbers = #tpu.dot_dimension_numbers<[1], [0], [0], [1], [0, 0, 1, 1], [], []>} : vector<32x32xf32>, vector<32x16xf32>, vector<32x16xf32> -> vector<32x16xf32>
    %21 = vector.broadcast %7 : vector<32x1xf32> to vector<32x16xf32>
    %22 = arith.addf %20, %21 : vector<32x16xf32>
    %cst_13 = arith.constant 0.000000e+00 : f32
    %23 = vector.broadcast %cst_13 : f32 to vector<32x16xf32>
    %24 = arith.maximumf %22, %23 : vector<32x16xf32>
    %25 = arith.addf %24, %19 : vector<32x16xf32>
    %26 = vector.shape_cast %8 : vector<32x1xf32> to vector<32x1xf32>
    %27 = vector.broadcast %26 : vector<32x1xf32> to vector<32x16xf32>
    %28 = arith.mulf %25, %27 : vector<32x16xf32>
    %cst_14 = arith.constant dense<0.000000e+00> : vector<16xf32>
    %29 = vector.multi_reduction <add>, %28, %cst_14 [0] : vector<32x16xf32> to vector<16xf32>
    %30 = vector.shape_cast %29 : vector<16xf32> to vector<1x16xf32>
    %31 = vector.broadcast %9 : vector<1x1xf32> to vector<1x16xf32>
    %32 = arith.addf %30, %31 : vector<1x16xf32>
    %c0_15 = arith.constant 0 : index
    %c0_16 = arith.constant 0 : index
    %33 = vector.load %arg3[%c0_15, %c0_16] : memref<1x16xf32, #tpu.memory_space<vmem>>, vector<1x16xf32>
    tpu.vector_store %arg3[%c0_15, %c0_16], %32 {strides = array<i32>} : memref<1x16xf32, #tpu.memory_space<vmem>>, vector<1x16xf32>,
    %cst_17 = arith.constant 0.000000e+00 : f32
    %34 = vector.broadcast %cst_17 : f32 to vector<32x16xf32>
    %35 = arith.cmpf ogt, %22, %34 : vector<32x16xf32>
    %cst_18 = arith.constant 0.000000e+00 : f32
    %36 = vector.broadcast %cst_18 : f32 to vector<32x16xf32>
    %37 = arith.select %35, %27, %36 : vector<32x16xi1>, vector<32x16xf32>
    %cst_19 = arith.constant dense<0.000000e+00> : vector<32x16xf32>
    %38 = tpu.matmul %3, %37, %cst_19 {dimension_numbers = #tpu.dot_dimension_numbers<[1], [0], [0], [1], [0, 0, 1, 1], [], []>} : vector<32x32xf32>, vector<32x16xf32>, vector<32x16xf32> -> vector<32x16xf32>
    %39 = arith.addf %38, %27 : vector<32x16xf32>
    %cst_20 = arith.constant 0.000000e+00 : f32
    %40 = vector.broadcast %cst_20 : f32 to vector<32x16xf32>
    %41 = arith.cmpf ogt, %13, %40 : vector<32x16xf32>
    %cst_21 = arith.constant 0.000000e+00 : f32
    %42 = vector.broadcast %cst_21 : f32 to vector<32x16xf32>
    %43 = arith.select %41, %39, %42 : vector<32x16xi1>, vector<32x16xf32>
    %44 = tpu.concatenate %43, %39 in 0 : vector<32x16xf32>, vector<32x16xf32> -> vector<64x16xf32>
    %cst_22 = arith.constant dense<0.000000e+00> : vector<18x16xf32>
    %45 = tpu.matmul %4, %44, %cst_22 {dimension_numbers = #tpu.dot_dimension_numbers<[1], [0], [0], [1], [0, 0, 1, 1], [], []>} : vector<18x64xf32>, vector<64x16xf32>, vector<18x16xf32> -> vector<18x16xf32>
    %c0_23 = arith.constant 0 : index
    %c0_24 = arith.constant 0 : index
    %46 = vector.load %arg2[%c0_23, %c0_24] : memref<18x16xf32, #tpu.memory_space<vmem>>, vector<18x16xf32>
    tpu.vector_store %arg2[%c0_23, %c0_24], %45 {strides = array<i32>} : memref<18x16xf32, #tpu.memory_space<vmem>>, vector<18x16xf32>,
    return
  }
}

</mosaic_0001>

<bundles_post_ra>
// kernel: split.1
= control target key start
LH: loop header
LB: loop body
LE: loop exit
PB: predicated region body
PF: predicated region fallthrough
CT: control target
= control target key end

     0   :  { %v3_v0 = vlaneseq  ;;  %v34_v10 = vmov 0.0   ;;  %s57_s0 = inlined_call_operand.vmem [shape: f32[18,2,8], index: 0, kind: input, shape index: {}]   ;;  %s58_s1 = inlined_call_operand.vmem [shape: bf16[3,2,8], index: 1, kind: output, shape index: {}]  }
   0x1   :  { %v2_v1 = vld [vmem:[%s57_s0] sm:$0xff]  ;;  %v24_v3 = vld [vmem:[%s57_s0 + $0x8] sm:$0xff]  ;;  %s33_s0 = smov 125  }
   0x2   :  { %v4_v2 = vand.u32 127, %v3_v0 }
   0x4   :  { %vm5_vm0 = vcmp.lt.s32.totalorder %v4_v2, 3 }
   0x5   :  { %v6_v4 = vsel %vm5_vm0, 0, %v2_v1  ;;  %v17_v5 = vsel %vm5_vm0, 0, %v24_v3 }
   0x6   :  { %v28_v6 = vpack.i.bf16 %v17_v5, %v6_v4 }
   0x8   :  { %29 = vrot.lane.b32.xlu0 %v28_v6, %s33_s0 }
  0x7a   :  { %v30_v7 = vpop.permute.xlu0 %29 }
  0x7b   :  { %v32_v8 = vunpack.i.h.bf16 %v30_v7  ;;  %v31_v9 = vunpack.i.l.bf16 %v30_v7 }
  0x7d   :  { %v22_v11 = vpack.c.bf16 %v34_v10, %v32_v8  ;;  %v10_v12 = vpack.c.bf16 %v34_v10, %v31_v9 }
  0x7f   :  { %25 = vst [vmem:[%s58_s1 + $0x4] sm:$0xf] %v22_v11  ;;  %11 = vst [vmem:[%s58_s1] sm:$0xf] %v10_v12 }

// kernel: split.2
= control target key start
LH: loop header
LB: loop body
LE: loop exit
PB: predicated region body
PF: predicated region fallthrough
CT: control target
= control target key end

     0   :  { %v3_v0 = vlaneseq  ;;  %v34_v10 = vmov 0.0   ;;  %s57_s0 = inlined_call_operand.vmem [shape: f32[18,2,8], index: 0, kind: input, shape index: {}]   ;;  %s58_s1 = inlined_call_operand.vmem [shape: bf16[9,2,8], index: 1, kind: output, shape index: {}]  }
   0x1   :  { %v2_v1 = vld [vmem:[%s57_s0] sm:$0xff]  ;;  %v24_v3 = vld [vmem:[%s57_s0 + $0x8] sm:$0xff]  ;;  %s33_s0 = smov 119  }
   0x2   :  { %v4_v2 = vand.u32 127, %v3_v0 }
   0x4   :  { %vm5_vm0 = vcmp.lt.s32.totalorder %v4_v2, 9 }
   0x5   :  { %v6_v4 = vsel %vm5_vm0, 0, %v2_v1  ;;  %v17_v5 = vsel %vm5_vm0, 0, %v24_v3 }
   0x6   :  { %v28_v6 = vpack.i.bf16 %v17_v5, %v6_v4 }
   0x8   :  { %29 = vrot.lane.b32.xlu0 %v28_v6, %s33_s0 }
  0x7a   :  { %v30_v7 = vpop.permute.xlu0 %29 }
  0x7b   :  { %v32_v8 = vunpack.i.h.bf16 %v30_v7  ;;  %v31_v9 = vunpack.i.l.bf16 %v30_v7 }
  0x7d   :  { %v22_v11 = vpack.c.bf16 %v34_v10, %v32_v8  ;;  %v10_v12 = vpack.c.bf16 %v34_v10, %v31_v9 }
  0x7f   :  { %25 = vst [vmem:[%s58_s1 + $0x4] sm:$0xf] %v22_v11  ;;  %11 = vst [vmem:[%s58_s1] sm:$0xf] %v10_v12 }

// kernel: energy_predictor_residual_forward.1
= control target key start
LH: loop header
LB: loop body
LE: loop exit
PB: predicated region body
PF: predicated region fallthrough
CT: control target
= control target key end

     0   :  { %vm36_vm0 = vcmask 146432   ;;  %v802_v2 = vmov 0   ;;  %v803_v3 = vmov 1   ;;  %vm61_vm1 = vcmask 1041408   ;;  %s806_s18 = smov 96   ;;  %s969_s0 = inlined_call_operand.vmem [shape: f32[18,16], index: 0, kind: input, shape index: {}]   ;;  %s970_s1 = inlined_call_operand.vmem [shape: f32[160,64], index: 1, kind: input, shape index: {}]   ;;  %s971_s3 = inlined_call_operand.vmem [shape: f32[1,16], index: 3, kind: output, shape index: {1}]   ;;  %s972_s2 = inlined_call_operand.vmem [shape: f32[18,16], index: 2, kind: output, shape index: {0}]  }
   0x1   :  { %v13_v0 = vld [vmem:[%s969_s0] sm:$0xff]  ;;  %v14_v1 = vld [vmem:[%s969_s0 + $0x8] sm:$0xff]  ;;  %789 = vset.pattern.permute.xlu0 %v802_v2  ;;  %790 = vset.pattern.permute.xlu1 %v803_v3  ;;  %v15_v6 = vld [vmem:[%s969_s0 + $0x10] sm:$0x3]  ;;  %vm238_vm2 = vcmask 261120   ;;  %v804_v19 = vmov 2  }
   0x2   :  { %v742_v4 = vpack.c.bf16 %v14_v1, %v13_v0  ;;  %v16_v5 = vld [vmem:[%s970_s1] sm:$0xff]  ;;  %v31_v7 = vld [vmem:[%s970_s1 + $0x78] sm:$0xff]  ;;  %v17_v9 = vld [vmem:[%s970_s1 + $0x8] sm:$0xff]  ;;  %v805_v20 = vmov 3   ;;  %v807_v22 = vmov 4   ;;  %vm364_vm12 = vcmask 130048  }
   0x3   :  { %677 = vmatprep.mubr.msk.f32.mxu0 %vm36_vm0, %v16_v5  ;;  %172 = vperm.xlu0 %789, %v31_v7   ;;  %v32_v8 = vld [vmem:[%s970_s1 + $0x80] sm:$0xff]  ;;  %v18_v10 = vld [vmem:[%s970_s1 + $0x10] sm:$0xff]  ;;  %v33_v11 = vld [vmem:[%s970_s1 + $0x88] sm:$0xff] }
   0x4   :  { %743 = vmatprep.subr.bf16.mxu0 %v742_v4  ;;  %195 = vperm.xlu1 %790, %v31_v7   ;;  %v19_v12 = vld [vmem:[%s970_s1 + $0x18] sm:$0xff]  ;;  %v20_v13 = vld [vmem:[%s970_s1 + $0x20] sm:$0xff]  ;;  %v34_v14 = vld [vmem:[%s970_s1 + $0x90] sm:$0xff] }
   0x5   :  { %745 = vmatpush3.bf16.msra.mxu0 %v742_v4  ;;  %v21_v15 = vld [vmem:[%s970_s1 + $0x28] sm:$0xff]  ;;  %v22_v16 = vld [vmem:[%s970_s1 + $0x30] sm:$0xff]  ;;  %v23_v17 = vld [vmem:[%s970_s1 + $0x38] sm:$0xff] }
   0x6   :  { %675 = vmatprep.subr.msk.mxu0 %vm61_vm1, %v15_v6  ;;  %v24_v18 = vld [vmem:[%s970_s1 + $0x40] sm:$0xff]  ;;  %v25_v21 = vld [vmem:[%s970_s1 + $0x48] sm:$0xff]  ;;  %v27_v23 = vld [vmem:[%s970_s1 + $0x58] sm:$0xff] }
   0x7   :  { %177 = vperm.xlu0 %789, %v32_v8   ;;  %697 = vmatprep.mubr.msk.f32.mxu1 %vm238_vm2, %v24_v18  ;;  %v26_v24 = vld [vmem:[%s970_s1 + $0x50] sm:$0xff]  ;;  %v35_v25 = vld [vmem:[%s970_s1 + $0x78] sm:$0x1]  ;;  %v29_v37 = vld [vmem:[%s970_s1 + $0x68] sm:$0xff] }
   0x8   :  { %199 = vperm.xlu1 %790, %v32_v8   ;;  %v30_v43 = vld [vmem:[%s970_s1 + $0x70] sm:$0x3] }
   0x9   :  { %676 = vmatpush3.msk.msra.mxu0 %vm61_vm1, %v15_v6  ;;  %vm809_vm1 = vmmov 0  }
   0xa   :  { %678 = vmatmul.mubr.msk.f32.vlgmr.msra.gmra.mrb[0].mxu0 %vm36_vm0, %v17_v9 }
   0xb   :  { %680 = vmatprep.mubr.msk.f32.mxu0 %vm36_vm0, %v18_v10  ;;  %182 = vperm.xlu0 %789, %v33_v11  }
   0xc   :  { %791 = vset.pattern.permute.xlu1 %v802_v2 }
   0xd   :  { %187 = vperm.xlu1 %791, %v34_v14  }
   0xe   :  { %681 = vmatmul.mubr.msk.f32.gmra.mrb[2].mxu0 %vm36_vm0, %v19_v12 }
   0xf   :  { %683 = vmatprep.mubr.msk.f32.mxu0 %vm36_vm0, %v20_v13  ;;  %792 = vset.pattern.permute.xlu0 %v803_v3 }
  0x10   :  { %203 = vperm.xlu0 %792, %v33_v11  }
  0x11   :  { %793 = vset.pattern.permute.xlu1 %v803_v3 }
  0x12   :  { %684 = vmatmul.mubr.msk.f32.gmra.mrb[4].mxu0 %vm36_vm0, %v21_v15  ;;  %207 = vperm.xlu1 %793, %v34_v14  }
  0x13   :  { %686 = vmatprep.mubr.msk.f32.mxu0 %vm36_vm0, %v22_v16 }
  0x14   :  { %795 = vset.pattern.permute.xlu0 %v804_v19 }
  0x15   :  { %227 = vperm.xlu0 %795, %v32_v8  }
  0x16   :  { %687 = vmatmul.mubr.msk.f32.gmra.mrb[6].mxu0 %vm36_vm0, %v23_v17  ;;  %794 = vset.pattern.permute.xlu1 %v804_v19  ;;  %vm384_vm0 = vcmask 122880  }
  0x17   :  { %223 = vperm.xlu1 %794, %v31_v7  }
  0x19   :  { %231 = vperm.xlu0 %795, %v33_v11  }
  0x1b   :  { %796 = vset.pattern.permute.xlu1 %v805_v20 }
  0x1c   :  { %345 = vperm.xlu1 %796, %v31_v7  }
  0x1d   :  { %798 = vset.pattern.permute.xlu0 %v805_v20 }
  0x1e   :  { %353 = vperm.xlu0 %798, %v33_v11  }
  0x20   :  { %349 = vperm.xlu1 %796, %v32_v8  }
  0x22   :  { %396 = vrot.lane.b32.xlu0 %v25_v21, %s806_s18 }
  0x23   :  { %801 = vset.pattern.permute.xlu0 %v807_v22 }
  0x24   :  { %797 = vset.pattern.permute.xlu1 %v804_v19 }
  0x25   :  { %235 = vperm.xlu1 %797, %v34_v14  }
  0x26   :  { %400 = vrot.lane.b32.xlu0 %v27_v23, %s806_s18 }
  0x29   :  { %799 = vset.pattern.permute.xlu1 %v805_v20 }
  0x2a   :  { %357 = vperm.xlu1 %799, %v34_v14  }
  0x2e   :  { %394 = vrot.lane.b32.xlu1 %v24_v18, %s806_s18 }
  0x2f   :  { %800 = vset.pattern.permute.xlu1 %v807_v22 }
  0x32   :  { %398 = vrot.lane.b32.xlu1 %v26_v24, %s806_s18 }
  0x36   :  { %380 = vperm.xlu1 %800, %v35_v25  }
  0x82   :  { %v173_v27 = vpop.permute.xlu0 %172 }
  0x83   :  { %v196_v26 = vpop.permute.xlu1 %195 }
  0x86   :  { %v178_v29 = vpop.permute.xlu0 %177 }
  0x87   :  { %v200_v28 = vpop.permute.xlu1 %199 }
  0x8a   :  { %v183_v36 = vpop.permute.xlu0 %182 }
  0x8c   :  { %v188_v34 = vpop.permute.xlu1 %187 }
  0x8f   :  { %v204_v50 = vpop.permute.xlu0 %203 }
  0x91   :  { %v208_v48 = vpop.permute.xlu1 %207 }
  0x94   :  { %v228_v4 = vpop.permute.xlu0 %227 }
  0x96   :  { %v224_v62 = vpop.permute.xlu1 %223 }
  0x98   :  { %v232_v5 = vpop.permute.xlu0 %231 }
  0x9b   :  { %v911_v63 = vpop.permute.xlu1 %345 }
  0x9d   :  { %v918_v11 = vpop.permute.xlu0 %353 }
  0x9f   :  { %v913_v0 = vpop.permute.xlu1 %349 }
  0xa0   :  { %v754_v12 = vpack.c.bf16 %v913_v0, %v911_v63 }
  0xa4   :  { %v236_v1 = vpop.permute.xlu1 %235 }
  0xa9   :  { %v915_v2 = vpop.permute.xlu1 %357 }
  0xaa   :  { %v760_v20 = vpack.c.bf16 %v915_v2, %v918_v11 }
  0xad   :  { %v395_v3 = vpop.permute.xlu1 %394 }
  0xdd   :  { %v679_v30 = vpop.f32.mrb[0].mxu0 }
  0xde   :  { %v191_v31 = vadd.f32 %v679_v30, %v178_v29  ;;  %v131_v32 = vpop.f32.mrb[1].mxu0 }
  0xdf   :  { %v190_v33 = vadd.f32 %v173_v27, %v131_v32  ;;  %v397_v27 = vpop.permute.xlu0 %396 }
  0xe0   :  { %vm496_vm3 = vcmp.gt.f32.partialorder %v191_v31, 0.0  ;;  %v215_v42 = vmax.f32 %v191_v31, 0.0 }
  0xe1   :  { %vm495_vm4 = vcmp.gt.f32.partialorder %v190_v33, 0.0  ;;  %v682_v35 = vpop.f32.mrb[2].mxu0  ;;  %v214_v46 = vmax.f32 %v190_v33, 0.0  ;;  %v399_v33 = vpop.permute.xlu1 %398 }
  0xe2   :  { %vm900_vm5 = vmpackc.low %vm496_vm3, %vm495_vm4  ;;  %v193_v38 = vadd.f32 %v682_v35, %v188_v34  ;;  %v141_v39 = vpop.f32.mrb[3].mxu0  ;;  %vm595_vm3 = vcmask 123904  }
  0xe3   :  { %v192_v40 = vadd.f32 %v183_v36, %v141_v39  ;;  %v401_v36 = vpop.permute.xlu0 %400 }
  0xe4   :  { %vm498_vm6 = vcmp.gt.f32.partialorder %v193_v38, 0.0  ;;  %v217_v53 = vmax.f32 %v193_v38, 0.0 }
  0xe5   :  { %vm497_vm7 = vcmp.gt.f32.partialorder %v192_v40, 0.0  ;;  %v685_v41 = vpop.f32.mrb[4].mxu0  ;;  %v216_v56 = vmax.f32 %v192_v40, 0.0 }
  0xe6   :  { %vm904_vm8 = vmpackc.low %vm498_vm6, %vm497_vm7  ;;  %v211_v44 = vadd.f32 %v685_v41, %v200_v28  ;;  %v151_v45 = vpop.f32.mrb[5].mxu0 }
  0xe7   :  { %v210_v47 = vadd.f32 %v196_v26, %v151_v45 }
  0xe8   :  { %v219_v49 = vadd.f32 %v215_v42, %v211_v44 }
  0xe9   :  { %v218_v51 = vadd.f32 %v214_v46, %v210_v47  ;;  %v688_v52 = vpop.f32.mrb[6].mxu0  ;;  %v381_v46 = vpop.permute.xlu1 %380 }
  0xea   :  { %v213_v54 = vadd.f32 %v688_v52, %v208_v48  ;;  %v161_v55 = vpop.f32.mrb[7].mxu0 }
  0xeb   :  { %v212_v57 = vadd.f32 %v204_v50, %v161_v55  ;;  %v746_v58 = vpack.c.bf16 %v219_v49, %v218_v51  ;;  %v810_v50 = vmov 0.0  }
  0xec   :  { %v221_v59 = vadd.f32 %v217_v53, %v213_v54  ;;  %733 = vmatprep.mubr.msk.f32.mxu0 %vm809_vm1, %v810_v50 }
  0xed   :  { %v220_v60 = vadd.f32 %v216_v56, %v212_v57  ;;  %747 = vmatprep.subr.bf16.mxu1 %v746_v58 }
  0xee   :  { %749 = vmatpush3.bf16.msra.mxu1 %v746_v58 }
  0xef   :  { %v750_v61 = vpack.c.bf16 %v221_v59, %v220_v60 }
  0xf1   :  { %751 = vmatprep.subr.bf16.mxu1 %v750_v61 }
  0xf2   :  { %753 = vmatpush3.bf16.msra.mxu1 %v750_v61  ;;  %v28_v61 = vld [vmem:[%s970_s1 + $0x60] sm:$0xff] }
  0xf5   :  { %698 = vmatmul.mubr.msk.f32.vlgmr.msra.gmra.mrb[0].mxu1 %vm238_vm2, %v25_v21 }
  0xf6   :  { %700 = vmatprep.mubr.msk.f32.mxu1 %vm238_vm2, %v26_v24 }
  0xf9   :  { %701 = vmatmul.mubr.msk.f32.gmra.mrb[2].mxu1 %vm238_vm2, %v27_v23 }
  0xfa   :  { %711 = vmatprep.mubr.msk.f32.mxu1 %vm238_vm2, %v395_v3 }
 0x1c8   :  { %v699_v6 = vpop.f32.mrb[0].mxu1 }
 0x1c9   :  { %v323_v7 = vadd.f32 %v699_v6, %v228_v4  ;;  %v317_v8 = vpop.f32.mrb[1].mxu1 }
 0x1ca   :  { %v318_v9 = vadd.f32 %v317_v8, %v224_v62 }
 0x1cb   :  { %v337_v10 = vmax.f32 %v323_v7, 0.0  ;;  %vm387_vm9 = vcmp.gt.f32.partialorder %v323_v7, 0.0 }
 0x1cc   :  { %v336_v13 = vmax.f32 %v318_v9, 0.0  ;;  %vm386_vm10 = vcmp.gt.f32.partialorder %v318_v9, 0.0  ;;  %v702_v14 = vpop.f32.mrb[2].mxu1 }
 0x1cd   :  { %v341_v15 = vadd.f32 %v337_v10, %v219_v49  ;;  %v333_v16 = vadd.f32 %v702_v14, %v236_v1  ;;  %v327_v17 = vpop.f32.mrb[3].mxu1  ;;  %vm755_vm11 = vmpackc.low %vm387_vm9, %vm386_vm10  ;;  %v808_v49 = vmov 0.0|0.0  }
 0x1ce   :  { %v340_v18 = vadd.f32 %v336_v13, %v218_v51  ;;  %v328_v19 = vadd.f32 %v327_v17, %v232_v5  ;;  %756 = vmatprep.subr.msk.bf16.mxu1 %vm755_vm11, %v754_v12  ;;  %766 = vmatprep.subr.bf16.mxu0 %v808_v49 }
 0x1cf   :  { %v361_v21 = vmul.f32 %v913_v0, %v341_v15  ;;  %v339_v22 = vmax.f32 %v333_v16, 0.0  ;;  %vm389_vm13 = vcmp.gt.f32.partialorder %v333_v16, 0.0  ;;  %759 = vmatpush3.bf16.msk.msra.mxu1 %vm755_vm11, %v754_v12 }
 0x1d0   :  { %v360_v23 = vmul.f32 %v911_v63, %v340_v18  ;;  %v338_v24 = vmax.f32 %v328_v19, 0.0  ;;  %vm388_vm14 = vcmp.gt.f32.partialorder %v328_v19, 0.0 }
 0x1d1   :  { %v366_v25 = vsel %vm364_vm12, %v361_v21, 0.0  ;;  %v343_v26 = vadd.f32 %v339_v22, %v221_v59  ;;  %vm761_vm15 = vmpackc.low %vm389_vm13, %vm388_vm14 }
 0x1d2   :  { %v365_v28 = vsel %vm364_vm12, %v360_v23, 0.0  ;;  %v342_v29 = vadd.f32 %v338_v24, %v220_v60  ;;  %762 = vmatprep.subr.msk.bf16.mxu1 %vm761_vm15, %v760_v20 }
 0x1d3   :  { %v367_v30 = vadd.f32 %v366_v25, %v365_v28  ;;  %765 = vmatpush3.bf16.msk.msra.mxu1 %vm761_vm15, %v760_v20  ;;  %v363_v31 = vmul.f32 %v915_v2, %v343_v26 }
 0x1d4   :  { %v362_v32 = vmul.f32 %v918_v11, %v342_v29 }
 0x1d5   :  { %v370_v38 = vsel %vm364_vm12, %v363_v31, 0.0 }
 0x1d6   :  { %v368_v34 = vsel %vm364_vm12, %v362_v32, 0.0  ;;  %712 = vmatmul.mubr.msk.f32.vlgmr.msra.gmra.mrb[4].mxu1 %vm238_vm2, %v397_v27 }
 0x1d7   :  { %v369_v35 = vadd.f32 %v368_v34, %v367_v30  ;;  %714 = vmatprep.mubr.msk.f32.mxu1 %vm238_vm2, %v399_v33 }
 0x1d9   :  { %v371_v39 = vadd.f32 %v370_v38, %v369_v35 }
 0x1da   :  { %715 = vmatmul.mubr.msk.f32.gmra.mrb[6].mxu1 %vm238_vm2, %v401_v36  ;;  %vm503_vm2 = vcmask 523264  }
 0x1db   :  { %v372_v40 = vrot.slane %v371_v39, 4 }
 0x1dd   :  { %v373_v41 = vadd.f32 %v372_v40, %v371_v39 }
 0x1df   :  { %v374_v42 = vrot.slane %v373_v41, 2 }
 0x1e1   :  { %v375_v44 = vadd.f32 %v374_v42, %v373_v41 }
 0x1e3   :  { %v376_v45 = vrot.slane %v375_v44, 1 }
 0x1e5   :  { %v377_v47 = vadd.f32 %v376_v45, %v375_v44 }
 0x1e7   :  { %v383_v48 = vadd.f32 %v381_v46, %v377_v47 }
 0x1e9   :  { %385 = vst.msk [vmem:[%s971_s3] sm:$0x1] %vm384_vm0, %v383_v48 }
 0x2a9   :  { %v713_v51 = vpop.f32.mrb[4].mxu1 }
 0x2aa   :  { %v482_v52 = vadd.f32 %v713_v51, %v913_v0  ;;  %v476_v53 = vpop.f32.mrb[5].mxu1 }
 0x2ab   :  { %v477_v54 = vadd.f32 %v476_v53, %v911_v63 }
 0x2ad   :  { %v767_v55 = vpack.c.bf16 %v482_v52, %v477_v54  ;;  %v716_v56 = vpop.f32.mrb[6].mxu1 }
 0x2ae   :  { %v492_v57 = vadd.f32 %v716_v56, %v915_v2  ;;  %v486_v58 = vpop.f32.mrb[7].mxu1 }
 0x2af   :  { %v487_v59 = vadd.f32 %v486_v58, %v918_v11  ;;  %769 = vmatpush3.bf16.msk.msra.mxu0 %vm900_vm5, %v767_v55 }
 0x2b0   :  { %770 = vmatprep.subr.bf16.mxu0 %v808_v49 }
 0x2b1   :  { %v771_v60 = vpack.c.bf16 %v492_v57, %v487_v59 }
 0x2b3   :  { %773 = vmatpush3.bf16.msk.msra.mxu0 %vm904_vm8, %v771_v60 }
 0x2b4   :  { %774 = vmatprep.subr.bf16.mxu0 %v808_v49 }
 0x2b7   :  { %776 = vmatpush3.bf16.msra.mxu0 %v767_v55 }
 0x2b8   :  { %777 = vmatprep.subr.bf16.mxu0 %v808_v49 }
 0x2bb   :  { %779 = vmatpush3.bf16.msra.mxu0 %v771_v60 }
 0x2be   :  { %734 = vmatmul.mubr.msk.f32.vlgmr.msra.gmra.mrb[8].mxu0 %vm503_vm2, %v28_v61 }
 0x2bf   :  { %736 = vmatprep.mubr.msk.f32.mxu0 %vm809_vm1, %v810_v50 }
 0x2c2   :  { %737 = vmatmul.mubr.msk.f32.gmra.mrb[10].mxu0 %vm503_vm2, %v29_v37 }
 0x2c3   :  { %739 = vmatprep.mubr.msk.f32.mxu0 %vm809_vm1, %v810_v50 }
 0x2c6   :  { %740 = vmatmul.mubr.msk.f32.gmra.mrb[12].mxu0 %vm503_vm2, %v30_v43 }
 0x391   :  { %v579_v62 = vpop.f32.mrb[8].mxu0 }
 0x392   :  { %593 = vst.msk [vmem:[%s972_s2] sm:$0xff] %vm364_vm12, %v579_v62  ;;  %v735_v63 = vpop.f32.mrb[9].mxu0 }
 0x395   :  { %v584_v0 = vpop.f32.mrb[10].mxu0 }
 0x396   :  { %594 = vst.msk [vmem:[%s972_s2 + $0x8] sm:$0xff] %vm364_vm12, %v584_v0  ;;  %v738_v1 = vpop.f32.mrb[11].mxu0 }
 0x399   :  { %v589_v2 = vpop.f32.mrb[12].mxu0 }
 0x39a   :  { %596 = vst.msk [vmem:[%s972_s2 + $0x10] sm:$0x3] %vm595_vm3, %v589_v2  ;;  %v741_v3 = vpop.f32.mrb[13].mxu0 }

</bundles_post_ra>
